<compile_context>
chip_gen: v7x
topology: tpu7x:2x2x1
jax: 0.10.0
libtpu: 0.0.40
codegen_flags: <defaults>
</compile_context>

<pallas_src>
import jax
import jax.numpy as jnp
from jax.experimental import pallas as pl
from jax.experimental.pallas import tpu as pltpu


def _identity_projection(x):
    # self.simclr.projection = Identity()  -> passthrough
    return x


def _simclr_encoder(x):
    # Injected encoder with projection replaced by Identity: modeled as identity
    # on pre-computed 512-dim encodings (see TODO above).
    return _identity_projection(x)


def _round_up(n, m):
    return ((n + m - 1) // m) * m


def linear_eval_kernel(enc_ref, w_ref, b_ref, o_ref):
    """One grid step: o = enc @ W + b for one batch tile.

    enc_ref: [TB, 512]   VMEM, bf16
    w_ref:   [512, Cp]   VMEM, bf16 (transposed + lane-padded nn.Linear weight)
    b_ref:   [1, Cp]     VMEM, f32  (lane-padded bias)
    o_ref:   [TB, Cp]    VMEM, f32
    """
    acc = jnp.dot(enc_ref[...], w_ref[...], preferred_element_type=jnp.float32)
    o_ref[...] = acc + b_ref[...]


def linear_evaluation_forward(x, w, b, *, tb=512):
    """Forward pass of LinearEvaluation.

    x: [B, 512] float32 encodings (simclr backbone modeled as identity)
    w: [C, 512] float32 nn.Linear weight
    b: [C]      float32 nn.Linear bias
    returns: [B, C] float32 logits
    """
    encoding = _simclr_encoder(x)           # glue (plain JAX / identity)
    B, D = encoding.shape
    C = w.shape[0]
    assert D == 512, "LinearEvaluation expects 512-dim encodings"

    # --- lane-pad the class dimension to a multiple of 128 (lane-dense stores,
    #     full MXU N dimension).  Padded columns are exactly zero and sliced off.
    Cp = max(128, _round_up(C, 128))
    w_t = jnp.zeros((D, Cp), dtype=jnp.bfloat16).at[:, :C].set(
        jnp.transpose(w).astype(jnp.bfloat16))
    b2 = jnp.zeros((1, Cp), dtype=jnp.float32).at[:, :C].set(
        b.astype(jnp.float32))

    # --- pick the batch tile: big by default, clamped for small batches,
    #     always a multiple of 8 sublanes.  Ragged batches are zero-padded.
    tb_eff = min(tb, _round_up(B, 8))
    tb_eff = _round_up(tb_eff, 8)
    num_tiles = pl.cdiv(B, tb_eff)
    B_pad = num_tiles * tb_eff

    enc_bf16 = encoding.astype(jnp.bfloat16)
    if B_pad != B:
        enc_bf16 = jnp.pad(enc_bf16, ((0, B_pad - B), (0, 0)))

    grid = (num_tiles,)
    out = pl.pallas_call(
        linear_eval_kernel,
        out_shape=jax.ShapeDtypeStruct((B_pad, Cp), jnp.float32),
        grid_spec=pltpu.PrefetchScalarGridSpec(
            num_scalar_prefetch=0,
            grid=grid,
            in_specs=[
                pl.BlockSpec((tb_eff, D), lambda i: (i, 0)),  # encoding tile
                pl.BlockSpec((D, Cp), lambda i: (0, 0)),      # weight, resident
                pl.BlockSpec((1, Cp), lambda i: (0, 0)),      # bias, resident
            ],
            out_specs=pl.BlockSpec((tb_eff, Cp), lambda i: (i, 0)),
        ),
        compiler_params=pltpu.CompilerParams(
            dimension_semantics=("parallel",),
        ),
    )(enc_bf16, w_t, b2)

    return out[:B, :C]


if __name__ == "__main__":
    key = jax.random.PRNGKey(0)
    k_x, k_w, k_b = jax.random.split(key, 3)

    batch = 12            # deliberately not a multiple of 8 -> exercises padding
    feat_dim = 512        # fixed by nn.Linear(512, nu_classes)
    nu_classes = 10

    # Deterministic synthetic parameters (shapes from nn.Linear(512, nu_classes)).
    x = jax.random.normal(k_x, (batch, feat_dim), dtype=jnp.float32)
    w = jax.random.normal(k_w, (nu_classes, feat_dim), dtype=jnp.float32) * 0.02
    b = jax.random.normal(k_b, (nu_classes,), dtype=jnp.float32) * 0.02

    logits = linear_evaluation_forward(x, w, b)
    logits = jax.block_until_ready(logits)

    # Correctness check against plain-JAX reference of the PyTorch forward.
    # bf16 activation/weight stream -> slightly looser tolerance than pure f32.
    ref = x @ w.T + b
    assert logits.shape == (batch, nu_classes)
    assert jnp.allclose(logits, ref, atol=3e-2, rtol=3e-2), (
        float(jnp.max(jnp.abs(logits - ref))))

    print("KERNEL_OK")
</pallas_src>

<mosaic_0001>
module attributes {stable_mosaic.version = 11 : i64} {
  func.func @linear_eval_kernel(%arg0: i32, %arg1: memref<16x512xbf16, #tpu.memory_space<vmem>>, %arg2: memref<512x128xbf16, #tpu.memory_space<vmem>>, %arg3: memref<1x128xf32, #tpu.memory_space<vmem>>, %arg4: memref<16x128xf32, #tpu.memory_space<vmem>>) attributes {dimension_semantics = [#tpu.dimension_semantics<parallel>], iteration_bounds = array<i64: 1>, scalar_prefetch = 0 : i64, scratch_operands = 0 : i64, tpu.core_type = #tpu.core_type<tc>, window_params = [{transform_indices = @transform_0, window_bounds = array<i64: 16, 512>}, {pipeline_mode = #tpu.pipeline_mode<synchronous>, transform_indices = @transform_1, window_bounds = array<i64: 512, 128>}, {pipeline_mode = #tpu.pipeline_mode<synchronous>, transform_indices = @transform_2, window_bounds = array<i64: 1, 128>}, {transform_indices = @transform_3, window_bounds = array<i64: 16, 128>}]} {
    %c0 = arith.constant 0 : index
    %c0_0 = arith.constant 0 : index
    %0 = vector.load %arg1[%c0, %c0_0] : memref<16x512xbf16, #tpu.memory_space<vmem>>, vector<16x512xbf16>
    %c0_1 = arith.constant 0 : index
    %c0_2 = arith.constant 0 : index
    %1 = vector.load %arg2[%c0_1, %c0_2] : memref<512x128xbf16, #tpu.memory_space<vmem>>, vector<512x128xbf16>
    %cst = arith.constant dense<0.000000e+00> : vector<16x128xf32>
    %2 = tpu.matmul %0, %1, %cst {dimension_numbers = #tpu.dot_dimension_numbers<[1], [0], [0], [1], [0, 0, 1, 1], [], []>} : vector<16x512xbf16>, vector<512x128xbf16>, vector<16x128xf32> -> vector<16x128xf32>
    %c0_3 = arith.constant 0 : index
    %c0_4 = arith.constant 0 : index
    %3 = vector.load %arg3[%c0_3, %c0_4] : memref<1x128xf32, #tpu.memory_space<vmem>>, vector<1x128xf32>
    %4 = vector.broadcast %3 : vector<1x128xf32> to vector<16x128xf32>
    %5 = arith.addf %2, %4 : vector<16x128xf32>
    %c0_5 = arith.constant 0 : index
    %c0_6 = arith.constant 0 : index
    %6 = vector.load %arg4[%c0_5, %c0_6] : memref<16x128xf32, #tpu.memory_space<vmem>>, vector<16x128xf32>
    tpu.vector_store %arg4[%c0_5, %c0_6], %5 {strides = array<i32>} : memref<16x128xf32, #tpu.memory_space<vmem>>, vector<16x128xf32>,
    return
  }
  func.func @transform_0(%arg0: i32) -> (i32, i32) {
    %c0_i32 = arith.constant 0 : i32
    %c0_i32_0 = arith.constant 0 : i32
    return %arg0, %c0_i32 : i32, i32
  }
  func.func @transform_1(%arg0: i32) -> (i32, i32) {
    %c0_i32 = arith.constant 0 : i32
    %c0_i32_0 = arith.constant 0 : i32
    %c0_i32_1 = arith.constant 0 : i32
    return %c0_i32, %c0_i32_0 : i32, i32
  }
  func.func @transform_2(%arg0: i32) -> (i32, i32) {
    %c0_i32 = arith.constant 0 : i32
    %c0_i32_0 = arith.constant 0 : i32
    %c0_i32_1 = arith.constant 0 : i32
    return %c0_i32, %c0_i32_0 : i32, i32
  }
  func.func @transform_3(%arg0: i32) -> (i32, i32) {
    %c0_i32 = arith.constant 0 : i32
    %c0_i32_0 = arith.constant 0 : i32
    return %arg0, %c0_i32 : i32, i32
  }
}

</mosaic_0001>

<bundles_post_ra>
// kernel: tpu_custom_call.1
= control target key start
LH: loop header
LB: loop body
LE: loop exit
PB: predicated region body
PF: predicated region fallthrough
CT: control target
= control target key end

     0   :  { %8 = vsyncpa [#allocation3], 0  ;;  %s701_s0 = inlined_call_operand.hbm [shape: bf16[16,512], index: 0, kind: input, shape index: {}]   ;;  %s702_s1 = inlined_call_operand.hbm [shape: bf16[512,128], index: 1, kind: input, shape index: {}]   ;;  %s703_s2 = inlined_call_operand.vmem [shape: f32[1,128], index: 2, kind: input, shape index: {}]   ;;  %s704_s3 = inlined_call_operand.hbm [shape: f32[16,128], index: 3, kind: output, shape index: {}]  }
   0x1   :  { %9 = vsyncpa [#allocation6], 0 }
   0x2   :  { %10 = vsyncpa [#allocation4], 0  ;;  %s633_s12 = smov [#allocation2]   ;;  %s561_s16 = scalar_lea.hbm %s701_s0, 512 }
   0x3   :  { %s16_s13 = sshll.u32 %s633_s12, 4  ;;  %p562_p0 = scmp.ne.s32.totalorder %s701_s0, %s561_s16  ;;  %s17_s13 = int_to_ptr.vmem [resolvable:$true] %s16_s13 }
   0x4   :  { %p565_p1 = scmp.lt.u32.totalorder %s561_s16, %s701_s0 }
   0x6   :  { %p567_p2 = pnand %p565_p1, %p562_p0 }
   0x8   :  { %570 = shalt.err (!%p567_p2)
}
   0x9   :  { %s571_s21 = scalar_lea.vmem %s17_s13, 512  ;;  %p576_p4 = scmp.lt.s32.totalorder %s17_s13, %s17_s13 }
   0xa   :  { %p572_p3 = scmp.ne.s32.totalorder %s17_s13, %s571_s21  ;;  %p577_p5 = scmp.lt.s32.totalorder %s571_s21, %s571_s21 }
   0xc   :  { %p578_p6 = por %p577_p5, %p576_p4 }
   0xe   :  { %p579_p7 = pnand %p578_p6, %p572_p3 }
  0x10   :  { %582 = shalt.err (!%p579_p7)
}
  0x11   :  { %s634_s22 = smov 256   ;;  %s635_s23 = smov 16  }
  0x12   :  { %22 = dma.hbm_to_vmem [thread:$0]  %s701_s0, 512, %s17_s13, [#allocation3], %s634_s22, %s634_s22, %s635_s23  }
  0x13   :  { %s636_s26 = smov [#allocation5]   ;;  %s583_s30 = scalar_lea.hbm %s702_s1, 4096 }
  0x14   :  { %s28_s27 = sshll.u32 %s636_s26, 4  ;;  %p584_p8 = scmp.ne.s32.totalorder %s702_s1, %s583_s30  ;;  %s29_s27 = int_to_ptr.vmem [resolvable:$true] %s28_s27 }
  0x15   :  { %p587_p9 = scmp.lt.u32.totalorder %s583_s30, %s702_s1 }
  0x17   :  { %p589_p10 = pnand %p587_p9, %p584_p8 }
  0x19   :  { %592 = shalt.err (!%p589_p10)
}
  0x1a   :  { %s593_s8 = scalar_lea.vmem %s29_s27, 4096  ;;  %p598_p12 = scmp.lt.s32.totalorder %s29_s27, %s29_s27 }
  0x1b   :  { %p594_p11 = scmp.ne.s32.totalorder %s29_s27, %s593_s8  ;;  %p599_p13 = scmp.lt.s32.totalorder %s593_s8, %s593_s8 }
  0x1d   :  { %p600_p0 = por %p599_p13, %p598_p12 }
  0x1f   :  { %p601_p1 = pnand %p600_p0, %p594_p11 }
  0x21   :  { %604 = shalt.err (!%p601_p1)
}
  0x22   :  { %s637_s0 = smov 64   ;;  %s638_s9 = smov 4  }
  0x23   :  { %34 = dma.hbm_to_vmem [thread:$0]  %s702_s1, 4096, %s29_s27, [#allocation6], %s637_s0, %s637_s0, %s638_s9  }
  0x24   :  { %627 = dma.done.wait [#allocation3], 512  }
  0x25   :  { %628 = vsyncadd [#allocation3], 4294966784 }
  0x26   :  { %629 = dma.done.wait [#allocation6], 4096  }
  0x27   :  { %630 = vsyncadd [#allocation6], 4294963200  ;;  %v523_v0 = vld [vmem:[#allocation5 + $0x40] sm:$0xff]   ;;  %v527_v4 = vld [vmem:[#allocation5 + $0x48] sm:$0xff]   ;;  %s639_s13 = smov [#allocation7]  }
  0x28   :  { %v524_v1 = vld [vmem:[#allocation5 + $0xc0] sm:$0xff]   ;;  %470 = vmatprep.subr.bf16.mxu0 %v523_v0  ;;  %v528_v5 = vld [vmem:[#allocation5 + $0xc8] sm:$0xff]   ;;  %v531_v8 = vld [vmem:[#allocation5 + $0x50] sm:$0xff]   ;;  %s420_s14 = sshll.u32 %s639_s13, 4  ;;  %s421_s14 = int_to_ptr.vmem [resolvable:$true] %s420_s14 }
  0x29   :  { %v525_v2 = vld [vmem:[#allocation5] sm:$0xff]   ;;  %492 = vmatprep.subr.bf16.mxu1 %v524_v1  ;;  %v529_v6 = vld [vmem:[#allocation5 + $0x8] sm:$0xff]   ;;  %v532_v9 = vld [vmem:[#allocation5 + $0xd0] sm:$0xff]   ;;  %p610_p3 = scmp.lt.s32.totalorder %s421_s14, %s421_s14 }
  0x2a   :  { %v526_v3 = vld [vmem:[#allocation5 + $0x80] sm:$0xff]   ;;  %471 = vmatpush3.bf16.msra.mxu0 %v525_v2  ;;  %v530_v7 = vld [vmem:[#allocation5 + $0x88] sm:$0xff]   ;;  %v533_v10 = vld [vmem:[#allocation5 + $0x10] sm:$0xff]  }
  0x2b   :  { %493 = vmatpush3.bf16.msra.mxu1 %v526_v3  ;;  %472 = vmatprep.subr.bf16.mxu0 %v527_v4  ;;  %v534_v11 = vld [vmem:[#allocation5 + $0x90] sm:$0xff]   ;;  %v535_v12 = vld [vmem:[#allocation5 + $0x58] sm:$0xff]   ;;  %v539_v16 = vld [vmem:[#allocation5 + $0x60] sm:$0xff]  }
  0x2c   :  { %494 = vmatprep.subr.bf16.mxu1 %v528_v5  ;;  %v536_v13 = vld [vmem:[#allocation5 + $0xd8] sm:$0xff]   ;;  %v540_v17 = vld [vmem:[#allocation5 + $0xe0] sm:$0xff]   ;;  %v543_v20 = vld [vmem:[#allocation5 + $0x68] sm:$0xff]  }
  0x2d   :  { %v537_v14 = vld [vmem:[#allocation5 + $0x18] sm:$0xff]   ;;  %v541_v18 = vld [vmem:[#allocation5 + $0x20] sm:$0xff]   ;;  %v544_v21 = vld [vmem:[#allocation5 + $0xe8] sm:$0xff]  }
  0x2e   :  { %473 = vmatpush3.bf16.msra.mxu0 %v529_v6  ;;  %v538_v15 = vld [vmem:[#allocation5 + $0x98] sm:$0xff]   ;;  %v542_v19 = vld [vmem:[#allocation5 + $0xa0] sm:$0xff]   ;;  %v545_v22 = vld [vmem:[#allocation5 + $0x28] sm:$0xff]  }
  0x2f   :  { %495 = vmatpush3.bf16.msra.mxu1 %v530_v7  ;;  %474 = vmatprep.subr.bf16.mxu0 %v531_v8  ;;  %v546_v23 = vld [vmem:[#allocation5 + $0xa8] sm:$0xff]   ;;  %v547_v24 = vld [vmem:[#allocation5 + $0x70] sm:$0xff]   ;;  %v551_v28 = vld [vmem:[#allocation5 + $0x78] sm:$0xff]  }
  0x30   :  { %496 = vmatprep.subr.bf16.mxu1 %v532_v9  ;;  %v548_v25 = vld [vmem:[#allocation5 + $0xf0] sm:$0xff]   ;;  %v552_v29 = vld [vmem:[#allocation5 + $0xf8] sm:$0xff]   ;;  %v433_v38 = vld [vmem:[%s703_s2] ss:$0 sm:$0xff]  ;;  %s605_s2 = scalar_lea.vmem %s421_s14, 256 }
  0x31   :  { %v549_v26 = vld [vmem:[#allocation5 + $0x30] sm:$0xff]   ;;  %v553_v30 = vld [vmem:[#allocation5 + $0x38] sm:$0xff]   ;;  %p606_p2 = scmp.ne.s32.totalorder %s421_s14, %s605_s2  ;;  %p611_p4 = scmp.lt.s32.totalorder %s605_s2, %s605_s2 }
  0x32   :  { %475 = vmatpush3.bf16.msra.mxu0 %v533_v10  ;;  %v550_v27 = vld [vmem:[#allocation5 + $0xb0] sm:$0xff]   ;;  %v554_v31 = vld [vmem:[#allocation5 + $0xb8] sm:$0xff]  }
  0x33   :  { %497 = vmatpush3.bf16.msra.mxu1 %v534_v11  ;;  %476 = vmatprep.subr.bf16.mxu0 %v535_v12  ;;  %v555_v32 = vld [vmem:[#allocation2] ss:$16 sps:$4 sm:$0xff]   ;;  %v557_v33 = vld [vmem:[#allocation2 + $0x4] ss:$16 sps:$4 sm:$0xff]   ;;  %v558_v34 = vld [vmem:[#allocation2 + $0x8] ss:$16 sps:$4 sm:$0xff]   ;;  %p612_p5 = por %p611_p4, %p610_p3 }
  0x34   :  { %498 = vmatprep.subr.bf16.mxu1 %v536_v13  ;;  %v560_v35 = vld [vmem:[#allocation2 + $0xc] ss:$16 sps:$4 sm:$0xff]   ;;  %363 = vmatprep.mubr.bf16.mxu0 %v557_v33 }
  0x35   :  { %404 = vmatprep.mubr.bf16.mxu1 %v560_v35  ;;  %p613_p6 = pnand %p612_p5, %p606_p2 }
  0x36   :  { %477 = vmatpush3.bf16.msra.mxu0 %v537_v14 }
  0x37   :  { %499 = vmatpush3.bf16.msra.mxu1 %v538_v15  ;;  %478 = vmatprep.subr.bf16.mxu0 %v539_v16 }
  0x38   :  { %500 = vmatprep.subr.bf16.mxu1 %v540_v17 }
  0x3a   :  { %479 = vmatpush3.bf16.msra.mxu0 %v541_v18 }
  0x3b   :  { %501 = vmatpush3.bf16.msra.mxu1 %v542_v19  ;;  %480 = vmatprep.subr.bf16.mxu0 %v543_v20 }
  0x3c   :  { %502 = vmatprep.subr.bf16.mxu1 %v544_v21 }
  0x3e   :  { %481 = vmatpush3.bf16.msra.mxu0 %v545_v22 }
  0x3f   :  { %503 = vmatpush3.bf16.msra.mxu1 %v546_v23  ;;  %482 = vmatprep.subr.bf16.mxu0 %v547_v24 }
  0x40   :  { %504 = vmatprep.subr.bf16.mxu1 %v548_v25 }
  0x42   :  { %483 = vmatpush3.bf16.msra.mxu0 %v549_v26 }
  0x43   :  { %505 = vmatpush3.bf16.msra.mxu1 %v550_v27  ;;  %484 = vmatprep.subr.bf16.mxu0 %v551_v28 }
  0x44   :  { %506 = vmatprep.subr.bf16.mxu1 %v552_v29 }
  0x46   :  { %485 = vmatpush3.bf16.msra.mxu0 %v553_v30 }
  0x47   :  { %507 = vmatpush3.bf16.msra.mxu1 %v554_v31 }
  0x49   :  { %364 = vmatmul.mubr.bf16.vlgmr.msra.gmra.mrb[0].mxu0 %v555_v32 }
  0x4a   :  { %405 = vmatmul.mubr.bf16.vlgmr.msra.gmra.mrb[0].mxu1 %v558_v34 }
 0x11c   :  { %v486_v36 = vpop.f32.mrb[0].mxu0 }
 0x11d   :  { %v508_v37 = vpop.f32.mrb[0].mxu1  ;;  %v487_v39 = vpop.f32.mrb[1].mxu0 }
 0x11e   :  { %v488_v40 = vadd.f32 %v487_v39, %v486_v36  ;;  %v509_v41 = vpop.f32.mrb[1].mxu1  ;;  %v489_v42 = vpop.f32.mrb[2].mxu0 }
 0x11f   :  { %v510_v43 = vadd.f32 %v509_v41, %v508_v37  ;;  %v511_v44 = vpop.f32.mrb[2].mxu1  ;;  %v490_v45 = vpop.f32.mrb[3].mxu0 }
 0x120   :  { %v366_v46 = vadd.f32 %v488_v40, %v433_v38  ;;  %v491_v47 = vadd.f32 %v490_v45, %v489_v42  ;;  %v512_v48 = vpop.f32.mrb[3].mxu1 }
 0x121   :  { %v513_v49 = vadd.f32 %v512_v48, %v511_v44 }
 0x122   :  { %v407_v50 = vadd.f32 %v510_v43, %v366_v46  ;;  %v369_v51 = vadd.f32 %v491_v47, %v433_v38 }
 0x124   :  { %413 = vst [vmem:[#allocation7] sm:$0xff] %v407_v50  ;;  %v410_v52 = vadd.f32 %v513_v49, %v369_v51 }
 0x126   :  { %414 = vst [vmem:[#allocation7 + $0x8] sm:$0xff] %v410_v52 }
 0x127   :  { %616 = shalt.err (!%p613_p6)
}
 0x128   :  { %s617_s17 = scalar_lea.hbm %s704_s3, 256 }
 0x129   :  { %p618_p7 = scmp.ne.s32.totalorder %s704_s3, %s617_s17  ;;  %p621_p8 = scmp.lt.u32.totalorder %s617_s17, %s704_s3 }
 0x12b   :  { %p623_p9 = pnand %p621_p8, %p618_p7 }
 0x12d   :  { %626 = shalt.err (!%p623_p9)
}
 0x12e   :  { %s640_s22 = smov 128   ;;  %s641_s23 = smov 8  }
 0x12f   :  { %426 = dma.vmem_to_hbm [thread:$0]  %s421_s14, 256, %s704_s3, [#allocation4], %s640_s22, %s640_s22, %s641_s23  }
 0x130   :  { %631 = dma.done.wait [#allocation4], 256  }
 0x131   :  { %632 = vsyncadd [#allocation4], 4294967040 }
 0x132   :  { %430 = vsyncpa [#allocation3], 1 }
 0x133   :  { %431 = vsyncpa [#allocation6], 1 }
 0x134   :  { %432 = vsyncpa [#allocation4], 1 }

</bundles_post_ra>
